<compile_context>
chip_gen: v5e
topology: v5e:2x2
jax: 0.10.0
libtpu: 0.0.40
codegen_flags: <defaults>
</compile_context>

<pallas_src>
import jax
import jax.numpy as jnp
from jax.experimental import pallas as pl
from jax.experimental.pallas import tpu as pltpu


# ---------------------------------------------------------------------------
# Kernel (fused backbone + CBM head)
# ---------------------------------------------------------------------------
def _cbm_fused_kernel(x_ref, wbb_ref, wc_ref, mean_ref, inv_std_ref,
                      wg_ref, bg_ref, logits_ref, projc_ref):
    """Fused CBM forward.

    x_ref       : (B, C*H*W)   flattened input images
    wbb_ref     : (C*H*W, D)   backbone weight with 1/(H*W) pooling folded in
    wc_ref      : (D, K)       proj_layer weight (W_c.T), bias-free
    mean_ref    : (1, K)       proj_mean
    inv_std_ref : (1, K)       1 / proj_std (precomputed in wrapper)
    wg_ref      : (K, N)       final weight (W_g.T)
    bg_ref      : (1, N)       final bias
    logits_ref  : (B, N)
    projc_ref   : (B, K)
    """
    # Synthetic backbone: (global avg pool + linear) as a single MXU matmul
    # with contraction K = C*H*W, then ReLU on the VPU. `feat` stays in vregs.
    feat = jnp.dot(x_ref[...], wbb_ref[...],
                   preferred_element_type=jnp.float32)            # (B, D)
    feat = jnp.maximum(feat, 0.0)

    # proj_layer (linear, no bias).
    c = jnp.dot(feat, wc_ref[...],
                preferred_element_type=jnp.float32)               # (B, K)

    # Normalize: multiply by precomputed reciprocal instead of dividing.
    proj_c = (c - mean_ref[...]) * inv_std_ref[...]               # (B, K)
    projc_ref[...] = proj_c

    # Final linear (+ bias).
    logits_ref[...] = (
        jnp.dot(proj_c, wg_ref[...], preferred_element_type=jnp.float32)
        + bg_ref[...]
    )


# ---------------------------------------------------------------------------
# Wrapper
# ---------------------------------------------------------------------------
def cbm_model_forward(x, w_backbone, W_c, proj_mean, proj_std, W_g, b_g):
    """Full CBM_model.forward: returns (logits, proj_c)."""
    B, C, H, W = x.shape
    HW = H * W
    D = w_backbone.shape[1]
    K = W_c.shape[0]
    N = W_g.shape[0]

    # Flatten images; fold the global average pool into the backbone weight:
    # x_flat @ w_expanded == mean_hw(x) @ w_backbone, because each channel row
    # of w_backbone is repeated H*W times and scaled by 1/(H*W). This moves the
    # lane-axis reduction off the XLU and onto the MXU (K = C*H*W contraction).
    x_flat = x.reshape(B, C * HW)
    w_expanded = jnp.repeat(w_backbone, HW, axis=0) / jnp.float32(HW)

    wc_t = W_c.T                       # (D, K)
    wg_t = W_g.T                       # (K, N)
    mean2 = proj_mean.reshape(1, K)
    inv_std2 = (1.0 / proj_std).reshape(1, K)
    bg2 = b_g.reshape(1, N)

    logits, proj_c = pl.pallas_call(
        _cbm_fused_kernel,
        out_shape=(
            jax.ShapeDtypeStruct((B, N), jnp.float32),
            jax.ShapeDtypeStruct((B, K), jnp.float32),
        ),
        grid=(1,),
        in_specs=[
            pl.BlockSpec((B, C * HW), lambda i: (0, 0)),
            pl.BlockSpec((C * HW, D), lambda i: (0, 0)),
            pl.BlockSpec((D, K), lambda i: (0, 0)),
            pl.BlockSpec((1, K), lambda i: (0, 0)),
            pl.BlockSpec((1, K), lambda i: (0, 0)),
            pl.BlockSpec((K, N), lambda i: (0, 0)),
            pl.BlockSpec((1, N), lambda i: (0, 0)),
        ],
        out_specs=(
            pl.BlockSpec((B, N), lambda i: (0, 0)),
            pl.BlockSpec((B, K), lambda i: (0, 0)),
        ),
        compiler_params=pltpu.CompilerParams(
            dimension_semantics=("arbitrary",),
            vmem_limit_bytes=32 * 1024 * 1024,
        ),
    )(x_flat, w_expanded, wc_t, mean2, inv_std2, wg_t, bg2)
    return logits, proj_c


# ---------------------------------------------------------------------------
# Main
# ---------------------------------------------------------------------------
if __name__ == "__main__":
    B, C, H, W = 2, 4, 16, 16     # input images (NCHW)
    D = 32                        # synthetic backbone feature dim
    K = 16                        # number of concepts  (W_c: (K, D))
    N = 8                         # number of classes   (W_g: (N, K))

    key = jax.random.PRNGKey(0)
    kx, kb, kc, km, ks, kg, kbias = jax.random.split(key, 7)

    x = jax.random.normal(kx, (B, C, H, W), dtype=jnp.float32)
    w_backbone = jax.random.normal(kb, (C, D), dtype=jnp.float32) * 0.1
    W_c = jax.random.normal(kc, (K, D), dtype=jnp.float32) * 0.1
    proj_mean = jax.random.normal(km, (1, K), dtype=jnp.float32) * 0.05
    proj_std = jnp.abs(jax.random.normal(ks, (1, K), dtype=jnp.float32)) + 0.5
    W_g = jax.random.normal(kg, (N, K), dtype=jnp.float32) * 0.1
    b_g = jax.random.normal(kbias, (N,), dtype=jnp.float32) * 0.01

    logits, proj_c = cbm_model_forward(
        x, w_backbone, W_c, proj_mean, proj_std, W_g, b_g)
    logits = jax.block_until_ready(logits)
    proj_c = jax.block_until_ready(proj_c)

    # Pure-JAX reference for correctness (module semantics: pool -> linear ->
    # ReLU -> proj -> normalize -> final linear).
    pooled_ref = jnp.mean(x.reshape(B, C, H * W), axis=-1)
    feat_ref = jnp.maximum(pooled_ref @ w_backbone, 0.0)
    c_ref = feat_ref @ W_c.T
    proj_c_ref = (c_ref - proj_mean) / proj_std
    logits_ref = proj_c_ref @ W_g.T + b_g

    assert logits.shape == (B, N) and proj_c.shape == (B, K)
    assert jnp.allclose(logits, logits_ref, atol=2e-4, rtol=2e-4)
    assert jnp.allclose(proj_c, proj_c_ref, atol=2e-4, rtol=2e-4)

    print("KERNEL_OK")
</pallas_src>

<mosaic_0001>
module attributes {stable_mosaic.version = 11 : i64} {
  func.func @_cbm_fused_kernel(%arg0: i32, %arg1: memref<2x1024xf32, #tpu.memory_space<vmem>>, %arg2: memref<1024x32xf32, #tpu.memory_space<vmem>>, %arg3: memref<32x16xf32, #tpu.memory_space<vmem>>, %arg4: memref<1x16xf32, #tpu.memory_space<vmem>>, %arg5: memref<1x16xf32, #tpu.memory_space<vmem>>, %arg6: memref<16x8xf32, #tpu.memory_space<vmem>>, %arg7: memref<1x8xf32, #tpu.memory_space<vmem>>, %arg8: memref<2x8xf32, #tpu.memory_space<vmem>>, %arg9: memref<2x16xf32, #tpu.memory_space<vmem>>) attributes {dimension_semantics = [#tpu.dimension_semantics<arbitrary>], iteration_bounds = array<i64: 1>, scalar_prefetch = 0 : i64, scratch_operands = 0 : i64, tpu.core_type = #tpu.core_type<tc>, window_params = [{pipeline_mode = #tpu.pipeline_mode<synchronous>, transform_indices = @transform_0, window_bounds = array<i64: 2, 1024>}, {pipeline_mode = #tpu.pipeline_mode<synchronous>, transform_indices = @transform_1, window_bounds = array<i64: 1024, 32>}, {pipeline_mode = #tpu.pipeline_mode<synchronous>, transform_indices = @transform_2, window_bounds = array<i64: 32, 16>}, {pipeline_mode = #tpu.pipeline_mode<synchronous>, transform_indices = @transform_3, window_bounds = array<i64: 1, 16>}, {pipeline_mode = #tpu.pipeline_mode<synchronous>, transform_indices = @transform_4, window_bounds = array<i64: 1, 16>}, {pipeline_mode = #tpu.pipeline_mode<synchronous>, transform_indices = @transform_5, window_bounds = array<i64: 16, 8>}, {pipeline_mode = #tpu.pipeline_mode<synchronous>, transform_indices = @transform_6, window_bounds = array<i64: 1, 8>}, {pipeline_mode = #tpu.pipeline_mode<synchronous>, transform_indices = @transform_7, window_bounds = array<i64: 2, 8>}, {pipeline_mode = #tpu.pipeline_mode<synchronous>, transform_indices = @transform_8, window_bounds = array<i64: 2, 16>}]} {
    %c0 = arith.constant 0 : index
    %c0_0 = arith.constant 0 : index
    %0 = vector.load %arg1[%c0, %c0_0] : memref<2x1024xf32, #tpu.memory_space<vmem>>, vector<2x1024xf32>
    %c0_1 = arith.constant 0 : index
    %c0_2 = arith.constant 0 : index
    %1 = vector.load %arg2[%c0_1, %c0_2] : memref<1024x32xf32, #tpu.memory_space<vmem>>, vector<1024x32xf32>
    %cst = arith.constant dense<0.000000e+00> : vector<2x32xf32>
    %2 = tpu.matmul %0, %1, %cst {dimension_numbers = #tpu.dot_dimension_numbers<[1], [0], [0], [1], [0, 0, 1, 1], [], []>} : vector<2x1024xf32>, vector<1024x32xf32>, vector<2x32xf32> -> vector<2x32xf32>
    %cst_3 = arith.constant 0.000000e+00 : f32
    %3 = vector.broadcast %cst_3 : f32 to vector<2x32xf32>
    %4 = arith.maximumf %2, %3 : vector<2x32xf32>
    %c0_4 = arith.constant 0 : index
    %c0_5 = arith.constant 0 : index
    %5 = vector.load %arg3[%c0_4, %c0_5] : memref<32x16xf32, #tpu.memory_space<vmem>>, vector<32x16xf32>
    %cst_6 = arith.constant dense<0.000000e+00> : vector<2x16xf32>
    %6 = tpu.matmul %4, %5, %cst_6 {dimension_numbers = #tpu.dot_dimension_numbers<[1], [0], [0], [1], [0, 0, 1, 1], [], []>} : vector<2x32xf32>, vector<32x16xf32>, vector<2x16xf32> -> vector<2x16xf32>
    %c0_7 = arith.constant 0 : index
    %c0_8 = arith.constant 0 : index
    %7 = vector.load %arg4[%c0_7, %c0_8] : memref<1x16xf32, #tpu.memory_space<vmem>>, vector<1x16xf32>
    %8 = vector.broadcast %7 : vector<1x16xf32> to vector<2x16xf32>
    %9 = arith.subf %6, %8 : vector<2x16xf32>
    %c0_9 = arith.constant 0 : index
    %c0_10 = arith.constant 0 : index
    %10 = vector.load %arg5[%c0_9, %c0_10] : memref<1x16xf32, #tpu.memory_space<vmem>>, vector<1x16xf32>
    %11 = vector.broadcast %10 : vector<1x16xf32> to vector<2x16xf32>
    %12 = arith.mulf %9, %11 : vector<2x16xf32>
    %c0_11 = arith.constant 0 : index
    %c0_12 = arith.constant 0 : index
    %13 = vector.load %arg9[%c0_11, %c0_12] : memref<2x16xf32, #tpu.memory_space<vmem>>, vector<2x16xf32>
    tpu.vector_store %arg9[%c0_11, %c0_12], %12 {strides = array<i32>} : memref<2x16xf32, #tpu.memory_space<vmem>>, vector<2x16xf32>,
    %c0_13 = arith.constant 0 : index
    %c0_14 = arith.constant 0 : index
    %14 = vector.load %arg6[%c0_13, %c0_14] : memref<16x8xf32, #tpu.memory_space<vmem>>, vector<16x8xf32>
    %cst_15 = arith.constant dense<0.000000e+00> : vector<2x8xf32>
    %15 = tpu.matmul %12, %14, %cst_15 {dimension_numbers = #tpu.dot_dimension_numbers<[1], [0], [0], [1], [0, 0, 1, 1], [], []>} : vector<2x16xf32>, vector<16x8xf32>, vector<2x8xf32> -> vector<2x8xf32>
    %c0_16 = arith.constant 0 : index
    %c0_17 = arith.constant 0 : index
    %16 = vector.load %arg7[%c0_16, %c0_17] : memref<1x8xf32, #tpu.memory_space<vmem>>, vector<1x8xf32>
    %17 = vector.broadcast %16 : vector<1x8xf32> to vector<2x8xf32>
    %18 = arith.addf %15, %17 : vector<2x8xf32>
    %c0_18 = arith.constant 0 : index
    %c0_19 = arith.constant 0 : index
    %19 = vector.load %arg8[%c0_18, %c0_19] : memref<2x8xf32, #tpu.memory_space<vmem>>, vector<2x8xf32>
    tpu.vector_store %arg8[%c0_18, %c0_19], %18 {strides = array<i32>} : memref<2x8xf32, #tpu.memory_space<vmem>>, vector<2x8xf32>,
    return
  }
  func.func @transform_0(%arg0: i32) -> (i32, i32) {
    %c0_i32 = arith.constant 0 : i32
    %c0_i32_0 = arith.constant 0 : i32
    %c0_i32_1 = arith.constant 0 : i32
    return %c0_i32, %c0_i32_0 : i32, i32
  }
  func.func @transform_1(%arg0: i32) -> (i32, i32) {
    %c0_i32 = arith.constant 0 : i32
    %c0_i32_0 = arith.constant 0 : i32
    %c0_i32_1 = arith.constant 0 : i32
    return %c0_i32, %c0_i32_0 : i32, i32
  }
  func.func @transform_2(%arg0: i32) -> (i32, i32) {
    %c0_i32 = arith.constant 0 : i32
    %c0_i32_0 = arith.constant 0 : i32
    %c0_i32_1 = arith.constant 0 : i32
    return %c0_i32, %c0_i32_0 : i32, i32
  }
  func.func @transform_3(%arg0: i32) -> (i32, i32) {
    %c0_i32 = arith.constant 0 : i32
    %c0_i32_0 = arith.constant 0 : i32
    %c0_i32_1 = arith.constant 0 : i32
    return %c0_i32, %c0_i32_0 : i32, i32
  }
  func.func @transform_4(%arg0: i32) -> (i32, i32) {
    %c0_i32 = arith.constant 0 : i32
    %c0_i32_0 = arith.constant 0 : i32
    %c0_i32_1 = arith.constant 0 : i32
    return %c0_i32, %c0_i32_0 : i32, i32
  }
  func.func @transform_5(%arg0: i32) -> (i32, i32) {
    %c0_i32 = arith.constant 0 : i32
    %c0_i32_0 = arith.constant 0 : i32
    %c0_i32_1 = arith.constant 0 : i32
    return %c0_i32, %c0_i32_0 : i32, i32
  }
  func.func @transform_6(%arg0: i32) -> (i32, i32) {
    %c0_i32 = arith.constant 0 : i32
    %c0_i32_0 = arith.constant 0 : i32
    %c0_i32_1 = arith.constant 0 : i32
    return %c0_i32, %c0_i32_0 : i32, i32
  }
  func.func @transform_7(%arg0: i32) -> (i32, i32) {
    %c0_i32 = arith.constant 0 : i32
    %c0_i32_0 = arith.constant 0 : i32
    %c0_i32_1 = arith.constant 0 : i32
    return %c0_i32, %c0_i32_0 : i32, i32
  }
  func.func @transform_8(%arg0: i32) -> (i32, i32) {
    %c0_i32 = arith.constant 0 : i32
    %c0_i32_0 = arith.constant 0 : i32
    %c0_i32_1 = arith.constant 0 : i32
    return %c0_i32, %c0_i32_0 : i32, i32
  }
}

</mosaic_0001>

<bundles_post_ra>
// kernel: tpu_custom_call.1
= control target key start
LH: loop header
LB: loop body
LE: loop exit
PB: predicated region body
PF: predicated region fallthrough
CT: control target
= control target key end

     0   :  { %14 = vsyncpa [#allocation3], 0  ;;  %s975_s0 = inlined_call_operand.vmem [shape: f32[2,1024], index: 0, kind: input, shape index: {}]   ;;  %s976_s1 = inlined_call_operand.vmem [shape: f32[1024,32], index: 1, kind: input, shape index: {}]   ;;  %s977_s2 = inlined_call_operand.vmem [shape: f32[32,16], index: 2, kind: input, shape index: {}]   ;;  %s978_s3 = inlined_call_operand.vmem [shape: f32[1,16], index: 3, kind: input, shape index: {}]   ;;  %s979_s4 = inlined_call_operand.vmem [shape: f32[1,16], index: 4, kind: input, shape index: {}]   ;;  %s980_s5 = inlined_call_operand.vmem [shape: f32[16,8], index: 5, kind: input, shape index: {}]   ;;  %s981_s6 = inlined_call_operand.vmem [shape: f32[1,8], index: 6, kind: input, shape index: {}]   ;;  %s982_s7 = inlined_call_operand.hbm [shape: f32[2,8], index: 7, kind: output, shape index: {0}]   ;;  %s983_s8 = inlined_call_operand.hbm [shape: f32[2,16], index: 8, kind: output, shape index: {1}]  }
   0x1   :  { %v47_v0 = vld [vmem:[%s976_s1 + $0x78] sm:$0xff]  ;;  %v46_v2 = vld [vmem:[%s976_s1 + $0x70] sm:$0xff]  ;;  %v45_v6 = vld [vmem:[%s976_s1 + $0x68] sm:$0xff] }
   0x2   :  { %v79_v1 = vld [vmem:[%s976_s1 + $0x178] sm:$0xff]  ;;  %181 = vmatpush.msra.mxu0 %v47_v0  ;;  %v78_v4 = vld [vmem:[%s976_s1 + $0x170] sm:$0xff]  ;;  %v77_v8 = vld [vmem:[%s976_s1 + $0x168] sm:$0xff] }
   0x3   :  { %221 = vmatpush.msra.mxu2 %v79_v1  ;;  %v63_v3 = vld [vmem:[%s976_s1 + $0xf8] sm:$0xff]  ;;  %v62_v7 = vld [vmem:[%s976_s1 + $0xf0] sm:$0xff]  ;;  %v61_v10 = vld [vmem:[%s976_s1 + $0xe8] sm:$0xff] }
   0x4   :  { %v95_v5 = vld [vmem:[%s976_s1 + $0x1f8] sm:$0xff]  ;;  %201 = vmatpush.msra.mxu1 %v63_v3  ;;  %182 = vmatpush.msra.mxu0 %v46_v2  ;;  %v94_v9 = vld [vmem:[%s976_s1 + $0x1f0] sm:$0xff]  ;;  %v44_v11 = vld [vmem:[%s976_s1 + $0x60] sm:$0xff] }
   0x5   :  { %241 = vmatpush.msra.mxu3 %v95_v5  ;;  %222 = vmatpush.msra.mxu2 %v78_v4  ;;  %v76_v12 = vld [vmem:[%s976_s1 + $0x160] sm:$0xff]  ;;  %v93_v13 = vld [vmem:[%s976_s1 + $0x1e8] sm:$0xff]  ;;  %v43_v16 = vld [vmem:[%s976_s1 + $0x58] sm:$0xff] }
   0x6   :  { %202 = vmatpush.msra.mxu1 %v62_v7  ;;  %183 = vmatpush.msra.mxu0 %v45_v6  ;;  %v60_v14 = vld [vmem:[%s976_s1 + $0xe0] sm:$0xff]  ;;  %v75_v17 = vld [vmem:[%s976_s1 + $0x158] sm:$0xff]  ;;  %v42_v20 = vld [vmem:[%s976_s1 + $0x50] sm:$0xff] }
   0x7   :  { %242 = vmatpush.msra.mxu3 %v94_v9  ;;  %223 = vmatpush.msra.mxu2 %v77_v8  ;;  %v92_v15 = vld [vmem:[%s976_s1 + $0x1e0] sm:$0xff]  ;;  %v59_v18 = vld [vmem:[%s976_s1 + $0xd8] sm:$0xff]  ;;  %v74_v21 = vld [vmem:[%s976_s1 + $0x150] sm:$0xff] }
   0x8   :  { %203 = vmatpush.msra.mxu1 %v61_v10  ;;  %184 = vmatpush.msra.mxu0 %v44_v11  ;;  %v91_v19 = vld [vmem:[%s976_s1 + $0x1d8] sm:$0xff]  ;;  %v58_v22 = vld [vmem:[%s976_s1 + $0xd0] sm:$0xff]  ;;  %v41_v24 = vld [vmem:[%s976_s1 + $0x48] sm:$0xff] }
   0x9   :  { %243 = vmatpush.msra.mxu3 %v93_v13  ;;  %224 = vmatpush.msra.mxu2 %v76_v12  ;;  %v90_v23 = vld [vmem:[%s976_s1 + $0x1d0] sm:$0xff]  ;;  %v73_v25 = vld [vmem:[%s976_s1 + $0x148] sm:$0xff]  ;;  %v40_v28 = vld [vmem:[%s976_s1 + $0x40] sm:$0xff] }
   0xa   :  { %204 = vmatpush.msra.mxu1 %v60_v14  ;;  %185 = vmatpush.msra.mxu0 %v43_v16  ;;  %v57_v26 = vld [vmem:[%s976_s1 + $0xc8] sm:$0xff]  ;;  %v72_v29 = vld [vmem:[%s976_s1 + $0x140] sm:$0xff]  ;;  %v39_v32 = vld [vmem:[%s976_s1 + $0x38] sm:$0xff] }
   0xb   :  { %244 = vmatpush.msra.mxu3 %v92_v15  ;;  %225 = vmatpush.msra.mxu2 %v75_v17  ;;  %v89_v27 = vld [vmem:[%s976_s1 + $0x1c8] sm:$0xff]  ;;  %v56_v30 = vld [vmem:[%s976_s1 + $0xc0] sm:$0xff]  ;;  %v71_v33 = vld [vmem:[%s976_s1 + $0x138] sm:$0xff] }
   0xc   :  { %205 = vmatpush.msra.mxu1 %v59_v18  ;;  %186 = vmatpush.msra.mxu0 %v42_v20  ;;  %v88_v31 = vld [vmem:[%s976_s1 + $0x1c0] sm:$0xff]  ;;  %v55_v34 = vld [vmem:[%s976_s1 + $0xb8] sm:$0xff]  ;;  %v38_v36 = vld [vmem:[%s976_s1 + $0x30] sm:$0xff] }
   0xd   :  { %245 = vmatpush.msra.mxu3 %v91_v19  ;;  %226 = vmatpush.msra.mxu2 %v74_v21  ;;  %v87_v35 = vld [vmem:[%s976_s1 + $0x1b8] sm:$0xff]  ;;  %v70_v37 = vld [vmem:[%s976_s1 + $0x130] sm:$0xff]  ;;  %v37_v40 = vld [vmem:[%s976_s1 + $0x28] sm:$0xff] }
   0xe   :  { %206 = vmatpush.msra.mxu1 %v58_v22  ;;  %187 = vmatpush.msra.mxu0 %v41_v24  ;;  %v54_v38 = vld [vmem:[%s976_s1 + $0xb0] sm:$0xff]  ;;  %v69_v41 = vld [vmem:[%s976_s1 + $0x128] sm:$0xff]  ;;  %v36_v44 = vld [vmem:[%s976_s1 + $0x20] sm:$0xff] }
   0xf   :  { %246 = vmatpush.msra.mxu3 %v90_v23  ;;  %227 = vmatpush.msra.mxu2 %v73_v25  ;;  %v86_v39 = vld [vmem:[%s976_s1 + $0x1b0] sm:$0xff]  ;;  %v53_v42 = vld [vmem:[%s976_s1 + $0xa8] sm:$0xff]  ;;  %v68_v45 = vld [vmem:[%s976_s1 + $0x120] sm:$0xff] }
  0x10   :  { %207 = vmatpush.msra.mxu1 %v57_v26  ;;  %188 = vmatpush.msra.mxu0 %v40_v28  ;;  %v85_v43 = vld [vmem:[%s976_s1 + $0x1a8] sm:$0xff]  ;;  %v52_v46 = vld [vmem:[%s976_s1 + $0xa0] sm:$0xff]  ;;  %v35_v48 = vld [vmem:[%s976_s1 + $0x18] sm:$0xff] }
  0x11   :  { %247 = vmatpush.msra.mxu3 %v89_v27  ;;  %228 = vmatpush.msra.mxu2 %v72_v29  ;;  %v84_v47 = vld [vmem:[%s976_s1 + $0x1a0] sm:$0xff]  ;;  %v67_v49 = vld [vmem:[%s976_s1 + $0x118] sm:$0xff]  ;;  %v34_v52 = vld [vmem:[%s976_s1 + $0x10] sm:$0xff] }
  0x12   :  { %208 = vmatpush.msra.mxu1 %v56_v30  ;;  %189 = vmatpush.msra.mxu0 %v39_v32  ;;  %v51_v50 = vld [vmem:[%s976_s1 + $0x98] sm:$0xff]  ;;  %v66_v53 = vld [vmem:[%s976_s1 + $0x110] sm:$0xff]  ;;  %v33_v56 = vld [vmem:[%s976_s1 + $0x8] sm:$0xff] }
  0x13   :  { %248 = vmatpush.msra.mxu3 %v88_v31  ;;  %229 = vmatpush.msra.mxu2 %v71_v33  ;;  %v83_v51 = vld [vmem:[%s976_s1 + $0x198] sm:$0xff]  ;;  %v50_v54 = vld [vmem:[%s976_s1 + $0x90] sm:$0xff]  ;;  %v65_v57 = vld [vmem:[%s976_s1 + $0x108] sm:$0xff] }
  0x14   :  { %209 = vmatpush.msra.mxu1 %v55_v34  ;;  %190 = vmatpush.msra.mxu0 %v38_v36  ;;  %v82_v55 = vld [vmem:[%s976_s1 + $0x190] sm:$0xff]  ;;  %v49_v58 = vld [vmem:[%s976_s1 + $0x88] sm:$0xff]  ;;  %v32_v60 = vld [vmem:[%s976_s1] sm:$0xff] }
  0x15   :  { %249 = vmatpush.msra.mxu3 %v87_v35  ;;  %230 = vmatpush.msra.mxu2 %v70_v37  ;;  %v81_v59 = vld [vmem:[%s976_s1 + $0x188] sm:$0xff]  ;;  %v64_v61 = vld [vmem:[%s976_s1 + $0x100] sm:$0xff]  ;;  %v111_v62 = vld [vmem:[%s976_s1 + $0x278] sm:$0xff] }
  0x16   :  { %210 = vmatpush.msra.mxu1 %v54_v38  ;;  %191 = vmatpush.msra.mxu0 %v37_v40  ;;  %v143_v63 = vld [vmem:[%s976_s1 + $0x378] sm:$0xff]  ;;  %v48_v0 = vld [vmem:[%s976_s1 + $0x80] sm:$0xff]  ;;  %v110_v2 = vld [vmem:[%s976_s1 + $0x270] sm:$0xff] }
  0x17   :  { %250 = vmatpush.msra.mxu3 %v86_v39  ;;  %231 = vmatpush.msra.mxu2 %v69_v41  ;;  %v80_v1 = vld [vmem:[%s976_s1 + $0x180] sm:$0xff]  ;;  %v127_v3 = vld [vmem:[%s976_s1 + $0x2f8] sm:$0xff]  ;;  %v142_v4 = vld [vmem:[%s976_s1 + $0x370] sm:$0xff] }
  0x18   :  { %211 = vmatpush.msra.mxu1 %v53_v42  ;;  %192 = vmatpush.msra.mxu0 %v36_v44  ;;  %v159_v5 = vld [vmem:[%s976_s1 + $0x3f8] sm:$0xff]  ;;  %v109_v6 = vld [vmem:[%s976_s1 + $0x268] sm:$0xff]  ;;  %v126_v7 = vld [vmem:[%s976_s1 + $0x2f0] sm:$0xff] }
  0x19   :  { %251 = vmatpush.msra.mxu3 %v85_v43  ;;  %232 = vmatpush.msra.mxu2 %v68_v45  ;;  %v141_v8 = vld [vmem:[%s976_s1 + $0x368] sm:$0xff]  ;;  %v158_v9 = vld [vmem:[%s976_s1 + $0x3f0] sm:$0xff]  ;;  %v108_v10 = vld [vmem:[%s976_s1 + $0x260] sm:$0xff] }
  0x1a   :  { %212 = vmatpush.msra.mxu1 %v52_v46  ;;  %193 = vmatpush.msra.mxu0 %v35_v48  ;;  %v125_v11 = vld [vmem:[%s976_s1 + $0x2e8] sm:$0xff]  ;;  %v30_v12 = vld [vmem:[%s975_s0] sm:$0xff]  ;;  %v107_v15 = vld [vmem:[%s976_s1 + $0x258] sm:$0xff] }
  0x1b   :  { %252 = vmatpush.msra.mxu3 %v84_v47  ;;  %233 = vmatpush.msra.mxu2 %v67_v49  ;;  %v140_v13 = vld [vmem:[%s976_s1 + $0x360] sm:$0xff]  ;;  %v157_v14 = vld [vmem:[%s976_s1 + $0x3e8] sm:$0xff]  ;;  %162 = vst [vmem:[#allocation1] ss:$4 sm:$0xff] %v30_v12  ;;  %v139_v17 = vld [vmem:[%s976_s1 + $0x358] sm:$0xff] }
  0x1c   :  { %213 = vmatpush.msra.mxu1 %v51_v50  ;;  %194 = vmatpush.msra.mxu0 %v34_v52  ;;  %v124_v16 = vld [vmem:[%s976_s1 + $0x2e0] sm:$0xff]  ;;  %v106_v19 = vld [vmem:[%s976_s1 + $0x250] sm:$0xff]  ;;  %v123_v20 = vld [vmem:[%s976_s1 + $0x2d8] sm:$0xff] }
  0x1d   :  { %253 = vmatpush.msra.mxu3 %v83_v51  ;;  %234 = vmatpush.msra.mxu2 %v66_v53  ;;  %v156_v18 = vld [vmem:[%s976_s1 + $0x3e0] sm:$0xff]  ;;  %v138_v21 = vld [vmem:[%s976_s1 + $0x350] sm:$0xff]  ;;  %v155_v22 = vld [vmem:[%s976_s1 + $0x3d8] sm:$0xff] }
  0x1e   :  { %214 = vmatpush.msra.mxu1 %v50_v54  ;;  %195 = vmatpush.msra.mxu0 %v33_v56  ;;  %v105_v23 = vld [vmem:[%s976_s1 + $0x248] sm:$0xff]  ;;  %v122_v24 = vld [vmem:[%s976_s1 + $0x2d0] sm:$0xff]  ;;  %v104_v28 = vld [vmem:[%s976_s1 + $0x240] sm:$0xff] }
  0x1f   :  { %254 = vmatpush.msra.mxu3 %v82_v55  ;;  %235 = vmatpush.msra.mxu2 %v65_v57  ;;  %v137_v25 = vld [vmem:[%s976_s1 + $0x348] sm:$0xff]  ;;  %v154_v26 = vld [vmem:[%s976_s1 + $0x3d0] sm:$0xff]  ;;  %v136_v30 = vld [vmem:[%s976_s1 + $0x340] sm:$0xff] }
  0x20   :  { %215 = vmatpush.msra.mxu1 %v49_v58  ;;  %196 = vmatpush.msra.mxu0 %v32_v60  ;;  %v31_v27 = vld [vmem:[%s975_s0 + $0x8] sm:$0xff]  ;;  %v103_v32 = vld [vmem:[%s976_s1 + $0x238] sm:$0xff]  ;;  %v120_v33 = vld [vmem:[%s976_s1 + $0x2c0] sm:$0xff] }
  0x21   :  { %255 = vmatpush.msra.mxu3 %v81_v59  ;;  %236 = vmatpush.msra.mxu2 %v64_v61  ;;  %v121_v29 = vld [vmem:[%s976_s1 + $0x2c8] sm:$0xff]  ;;  %v135_v34 = vld [vmem:[%s976_s1 + $0x338] sm:$0xff]  ;;  %v152_v35 = vld [vmem:[%s976_s1 + $0x3c0] sm:$0xff]  ;;  %164 = vst [vmem:[#allocation1 + $0x20] ss:$4 sm:$0xff] %v31_v27 }
  0x22   :  { %261 = vmatpush.msrb.mxu0 %v111_v62  ;;  %216 = vmatpush.msra.mxu1 %v48_v0  ;;  %v153_v31 = vld [vmem:[%s976_s1 + $0x3c8] sm:$0xff] }
  0x23   :  { %301 = vmatpush.msrb.mxu2 %v143_v63  ;;  %256 = vmatpush.msra.mxu3 %v80_v1 }
  0x24   :  { %262 = vmatpush.msrb.mxu0 %v110_v2  ;;  %281 = vmatpush.msrb.mxu1 %v127_v3 }
  0x25   :  { %302 = vmatpush.msrb.mxu2 %v142_v4  ;;  %321 = vmatpush.msrb.mxu3 %v159_v5 }
  0x26   :  { %263 = vmatpush.msrb.mxu0 %v109_v6  ;;  %282 = vmatpush.msrb.mxu1 %v126_v7 }
  0x27   :  { %303 = vmatpush.msrb.mxu2 %v141_v8  ;;  %322 = vmatpush.msrb.mxu3 %v158_v9 }
  0x28   :  { %264 = vmatpush.msrb.mxu0 %v108_v10  ;;  %283 = vmatpush.msrb.mxu1 %v125_v11 }
  0x29   :  { %304 = vmatpush.msrb.mxu2 %v140_v13  ;;  %323 = vmatpush.msrb.mxu3 %v157_v14 }
  0x2a   :  { %265 = vmatpush.msrb.mxu0 %v107_v15  ;;  %284 = vmatpush.msrb.mxu1 %v124_v16 }
  0x2b   :  { %305 = vmatpush.msrb.mxu2 %v139_v17  ;;  %324 = vmatpush.msrb.mxu3 %v156_v18 }
  0x2c   :  { %266 = vmatpush.msrb.mxu0 %v106_v19  ;;  %285 = vmatpush.msrb.mxu1 %v123_v20 }
  0x2d   :  { %306 = vmatpush.msrb.mxu2 %v138_v21  ;;  %325 = vmatpush.msrb.mxu3 %v155_v22 }
  0x2e   :  { %267 = vmatpush.msrb.mxu0 %v105_v23  ;;  %286 = vmatpush.msrb.mxu1 %v122_v24 }
  0x2f   :  { %307 = vmatpush.msrb.mxu2 %v137_v25  ;;  %326 = vmatpush.msrb.mxu3 %v154_v26 }
  0x30   :  { %268 = vmatpush.msrb.mxu0 %v104_v28  ;;  %287 = vmatpush.msrb.mxu1 %v121_v29 }
  0x31   :  { %15 = vsyncpa [#allocation5], 0  ;;  %308 = vmatpush.msrb.mxu2 %v136_v30  ;;  %327 = vmatpush.msrb.mxu3 %v153_v31  ;;  %v102_v36 = vld [vmem:[%s976_s1 + $0x230] sm:$0xff]  ;;  %v119_v37 = vld [vmem:[%s976_s1 + $0x2b8] sm:$0xff]  ;;  %vm346_vm0 = vcmask 261120   ;;  %vm388_vm1 = vcmask 130048  }
  0x32   :  { %269 = vmatpush.msrb.mxu0 %v103_v32  ;;  %288 = vmatpush.msrb.mxu1 %v120_v33  ;;  %v134_v38 = vld [vmem:[%s976_s1 + $0x330] sm:$0xff]  ;;  %v151_v39 = vld [vmem:[%s976_s1 + $0x3b8] sm:$0xff]  ;;  %v101_v40 = vld [vmem:[%s976_s1 + $0x228] sm:$0xff]  ;;  %vm380_vm2 = vcmask 123904   ;;  %s505_s11 = smov [#allocation4]   ;;  %s432_s14 = sshll.u32 %s983_s8, 4  ;;  %s433_s14 = int_to_ptr.hbm [resolvable:$true] %s432_s14 }
  0x33   :  { %309 = vmatpush.msrb.mxu2 %v135_v34  ;;  %328 = vmatpush.msrb.mxu3 %v152_v35  ;;  %v118_v41 = vld [vmem:[%s976_s1 + $0x2b0] sm:$0xff]  ;;  %v133_v42 = vld [vmem:[%s976_s1 + $0x328] sm:$0xff]  ;;  %v100_v45 = vld [vmem:[%s976_s1 + $0x220] sm:$0xff]  ;;  %s430_s12 = sshll.u32 %s505_s11, 4  ;;  %s421_s19 = sshll.u32 %s982_s7, 4  ;;  %vm412_vm3 = vcmask 58368   ;;  %s431_s12 = int_to_ptr.vmem [resolvable:$true] %s430_s12  ;;  %s422_s19 = int_to_ptr.hbm [resolvable:$true] %s421_s19 }
  0x34   :  { %270 = vmatpush.msrb.mxu0 %v102_v36  ;;  %289 = vmatpush.msrb.mxu1 %v119_v37  ;;  %v150_v43 = vld [vmem:[%s976_s1 + $0x3b0] sm:$0xff]  ;;  %v117_v46 = vld [vmem:[%s976_s1 + $0x2a8] sm:$0xff]  ;;  %v132_v47 = vld [vmem:[%s976_s1 + $0x320] sm:$0xff] }
  0x35   :  { %310 = vmatpush.msrb.mxu2 %v134_v38  ;;  %329 = vmatpush.msrb.mxu3 %v151_v39  ;;  %v167_v44 = vld.sshfl [vmem:[#allocation1 + $0x10] sm:$0xff pattern:$0x73625140]  ;;  %v149_v48 = vld [vmem:[%s976_s1 + $0x3a8] sm:$0xff]  ;;  %v99_v51 = vld [vmem:[%s976_s1 + $0x218] sm:$0xff] }
  0x36   :  { %271 = vmatpush.msrb.mxu0 %v101_v40  ;;  %290 = vmatpush.msrb.mxu1 %v118_v41  ;;  %v165_v49 = vld.sshfl [vmem:[#allocation1] sm:$0xff pattern:$0x73625140]  ;;  %v168_v50 = vld.sshfl [vmem:[#allocation1 + $0x18] sm:$0xff pattern:$0x73625140] }
  0x37   :  { %311 = vmatpush.msrb.mxu2 %v133_v42  ;;  %330 = vmatpush.msrb.mxu3 %v150_v43  ;;  %v116_v52 = vld [vmem:[%s976_s1 + $0x2a0] sm:$0xff]  ;;  %v131_v53 = vld [vmem:[%s976_s1 + $0x318] sm:$0xff]  ;;  %v166_v55 = vld.sshfl [vmem:[#allocation1 + $0x8] sm:$0xff pattern:$0x73625140] }
  0x38   :  { %237 = vmatmul.f32.vlgmr.msra.gmra.mxu2 %v167_v44  ;;  %272 = vmatpush.msrb.mxu0 %v100_v45  ;;  %v148_v54 = vld [vmem:[%s976_s1 + $0x3a0] sm:$0xff]  ;;  %v98_v56 = vld [vmem:[%s976_s1 + $0x210] sm:$0xff]  ;;  %v115_v57 = vld [vmem:[%s976_s1 + $0x298] sm:$0xff] }
  0x39   :  { %291 = vmatpush.msrb.mxu1 %v117_v46  ;;  %312 = vmatpush.msrb.mxu2 %v132_v47  ;;  %v130_v58 = vld [vmem:[%s976_s1 + $0x310] sm:$0xff]  ;;  %v147_v59 = vld [vmem:[%s976_s1 + $0x398] sm:$0xff]  ;;  %v97_v60 = vld [vmem:[%s976_s1 + $0x208] sm:$0xff] }
  0x3a   :  { %331 = vmatpush.msrb.mxu3 %v149_v48  ;;  %197 = vmatmul.f32.vlgmr.msra.gmra.mxu0 %v165_v49  ;;  %v114_v61 = vld [vmem:[%s976_s1 + $0x290] sm:$0xff]  ;;  %v129_v62 = vld [vmem:[%s976_s1 + $0x308] sm:$0xff]  ;;  %v96_v0 = vld [vmem:[%s976_s1 + $0x200] sm:$0xff] }
  0x3b   :  { %257 = vmatmul.f32.vlgmr.msra.gmra.mxu3 %v168_v50  ;;  %273 = vmatpush.msrb.mxu0 %v99_v51  ;;  %v146_v63 = vld [vmem:[%s976_s1 + $0x390] sm:$0xff]  ;;  %v113_v1 = vld [vmem:[%s976_s1 + $0x288] sm:$0xff]  ;;  %v128_v2 = vld [vmem:[%s976_s1 + $0x300] sm:$0xff] }
  0x3c   :  { %292 = vmatpush.msrb.mxu1 %v116_v52  ;;  %313 = vmatpush.msrb.mxu2 %v131_v53  ;;  %v145_v3 = vld [vmem:[%s976_s1 + $0x388] sm:$0xff]  ;;  %v169_v4 = vld.sshfl [vmem:[#allocation1 + $0x20] sm:$0xff pattern:$0x73625140]  ;;  %v345_v10 = vld [vmem:[%s977_s2 + $0x18] sm:$0xff] }
  0x3d   :  { %332 = vmatpush.msrb.mxu3 %v148_v54  ;;  %217 = vmatmul.f32.vlgmr.msra.gmra.mxu1 %v166_v55  ;;  %v171_v5 = vld.sshfl [vmem:[#allocation1 + $0x30] sm:$0xff pattern:$0x73625140]  ;;  %v112_v6 = vld [vmem:[%s976_s1 + $0x280] sm:$0xff]  ;;  %v343_v12 = vld [vmem:[%s977_s2 + $0x8] sm:$0xff] }
  0x3e   :  { %274 = vmatpush.msrb.mxu0 %v98_v56  ;;  %293 = vmatpush.msrb.mxu1 %v115_v57  ;;  %v144_v7 = vld [vmem:[%s976_s1 + $0x380] sm:$0xff]  ;;  %v170_v8 = vld.sshfl [vmem:[#allocation1 + $0x28] sm:$0xff pattern:$0x73625140]  ;;  %v344_v11 = vld [vmem:[%s977_s2 + $0x10] sm:$0xff] }
  0x3f   :  { %314 = vmatpush.msrb.mxu2 %v130_v58  ;;  %333 = vmatpush.msrb.mxu3 %v147_v59  ;;  %v172_v9 = vld.sshfl [vmem:[#allocation1 + $0x38] sm:$0xff pattern:$0x73625140]  ;;  %v342_v13 = vld [vmem:[%s977_s2] sm:$0xff]  ;;  %v383_v14 = vld [vmem:[%s980_s5 + $0x8] sm:$0xff] }
  0x40   :  { %275 = vmatpush.msrb.mxu0 %v97_v60  ;;  %294 = vmatpush.msrb.mxu1 %v114_v61  ;;  %v382_v31 = vld [vmem:[%s980_s5] sm:$0xff] }
  0x41   :  { %315 = vmatpush.msrb.mxu2 %v129_v62  ;;  %334 = vmatpush.msrb.mxu3 %v146_v63  ;;  %v450_v32 = vld [vmem:[%s978_s3] ss:$0 sm:$0xff] }
  0x42   :  { %276 = vmatpush.msrb.mxu0 %v96_v0  ;;  %295 = vmatpush.msrb.mxu1 %v113_v1  ;;  %v451_v33 = vld [vmem:[%s979_s4] ss:$0 sm:$0xff]  ;;  %s506_s4 = smov [#allocation2]  }
  0x43   :  { %316 = vmatpush.msrb.mxu2 %v128_v2  ;;  %335 = vmatpush.msrb.mxu3 %v145_v3  ;;  %v452_v37 = vld [vmem:[%s981_s6] ss:$0 sm:$0xff]  ;;  %s419_s16 = sshll.u32 %s506_s4, 4  ;;  %s420_s16 = int_to_ptr.vmem [resolvable:$true] %s419_s16 }
  0x44   :  { %277 = vmatmul.f32.vlgmr.msrb.gmra.mxu0 %v169_v4  ;;  %317 = vmatmul.f32.vlgmr.msrb.gmra.mxu2 %v171_v5 }
  0x45   :  { %296 = vmatpush.msrb.mxu1 %v112_v6  ;;  %336 = vmatpush.msrb.mxu3 %v144_v7 }
  0x46   :  { %297 = vmatmul.f32.vlgmr.msrb.gmra.mxu1 %v170_v8  ;;  %337 = vmatmul.f32.vlgmr.msrb.gmra.mxu3 %v172_v9 }
  0x47   :  { %362 = vmatpush.msra.mxu0 %v345_v10  ;;  %406 = vmatpush.msra.mxu1 %v383_v14 }
  0x49   :  { %363 = vmatpush.msra.mxu0 %v344_v11  ;;  %407 = vmatpush.msra.mxu1 %v382_v31 }
  0x4b   :  { %364 = vmatpush.msra.mxu0 %v343_v12 }
  0x4d   :  { %365 = vmatpush.msra.mxu0 %v342_v13 }
  0xb7   :  { %v198_v15 = vpop.f32.mrf.mxu0 }
  0xba   :  { %v218_v16 = vpop.f32.mrf.mxu1 }
  0xbb   :  { %v219_v17 = vadd.f32 %v218_v16, %v198_v15  ;;  %v238_v18 = vpop.f32.mrf.mxu2 }
  0xbd   :  { %v239_v19 = vadd.f32 %v238_v18, %v219_v17 }
  0xbe   :  { %v258_v20 = vpop.f32.mrf.mxu3 }
  0xbf   :  { %v259_v21 = vadd.f32 %v258_v20, %v239_v19 }
  0xc1   :  { %v278_v22 = vpop.f32.mrf.mxu0 }
  0xc2   :  { %v279_v23 = vadd.f32 %v278_v22, %v259_v21 }
  0xc3   :  { %v298_v24 = vpop.f32.mrf.mxu1 }
  0xc4   :  { %v299_v25 = vadd.f32 %v298_v24, %v279_v23 }
  0xc7   :  { %v318_v26 = vpop.f32.mrf.mxu2 }
  0xc8   :  { %v319_v27 = vadd.f32 %v318_v26, %v299_v25 }
  0xc9   :  { %v338_v28 = vpop.f32.mrf.mxu3 }
  0xca   :  { %v339_v29 = vadd.f32 %v338_v28, %v319_v27 }
  0xcc   :  { %v341_v30 = vmax.f32 %v339_v29, 0.0 }
  0xce   :  { %446 = vmatmul.msk.f32.vlgmr.msra.gmra.mxu0 %vm346_vm0, %v341_v30 }
 0x14b   :  { %v367_v34 = vpop.f32.mrf.mxu0 }
 0x14c   :  { %v374_v35 = vsub.f32 %v367_v34, %v450_v32 }
 0x14e   :  { %v379_v36 = vmul.f32 %v451_v33, %v374_v35 }
 0x150   :  { %447 = vmatmul.msk.f32.vlgmr.msra.gmra.mxu1 %vm388_vm1, %v379_v36  ;;  %381 = vst.msk [vmem:[#allocation4] sm:$0x3] %vm380_vm2, %v379_v36 }
 0x151   :  { %435 = dma.vmem_to_hbm [thread:$0]  %s431_s12, 32, %s433_s14, [#allocation5]  }
 0x1cd   :  { %v409_v38 = vpop.f32.mrf.mxu1 }
 0x1ce   :  { %v410_v39 = vadd.f32 %v452_v37, %v409_v38 }
 0x1d0   :  { %413 = vst.msk [vmem:[#allocation2] sm:$0x3] %vm412_vm3, %v410_v39 }
 0x1d1   :  { %424 = dma.vmem_to_hbm [thread:$0]  %s420_s16, 32, %s422_s19, [#allocation3]  }
 0x1d2   :  { %501 = dma.done.wait [#allocation3], 32  }
 0x1d3   :  { %502 = vsyncadd [#allocation3], 4294967264 }
 0x1d4   :  { %503 = dma.done.wait [#allocation5], 32  }
 0x1d5   :  { %504 = vsyncadd [#allocation5], 4294967264 }
 0x1d6   :  { %444 = vsyncpa [#allocation3], 1 }
 0x1d7   :  { %445 = vsyncpa [#allocation5], 1 }

</bundles_post_ra>
